<compile_context>
chip_gen: v6e
topology: v6e:2x2x1
jax: 0.10.0
libtpu: 0.0.40
codegen_flags: <defaults>
</compile_context>

<pallas_src>
import functools

import jax
import jax.numpy as jnp
from jax.experimental import pallas as pl
from jax.experimental.pallas import tpu as pltpu


def _ceil_div(a, b):
    return -(-a // b)


def _round_up(a, b):
    return _ceil_div(a, b) * b


def _tpu_vmem_bytes():
    """Per-core VMEM capacity; conservative 64 MiB (v7x) if unknown."""
    try:
        info = pltpu.get_tpu_info()
        cap = getattr(info, "vmem_capacity_bytes", None)
        if cap:
            return int(cap)
    except Exception:
        pass
    return 64 * 1024 * 1024


def _choose_tile(n, target, gran):
    """Return (tile, padded_n): `tile` is a multiple of `gran` (or the full,
    possibly unaligned dim when n <= target) and divides padded_n >= n."""
    if n <= target:
        return n, n
    lo = max(gran, (target // 4 // gran) * gran)
    t = (target // gran) * gran
    while t >= lo:                       # prefer an exact aligned divisor
        if n % t == 0:
            return t, n
        t -= gran
    k = _ceil_div(n, target)             # else near-equal chunks + zero pad
    tile = _round_up(_ceil_div(n, k), gran)
    return tile, tile * k


def _gcn_kernel_reassoc(nf_ref, adj_ref, w_ref, b_ref, out_ref, acc_ref,
                        *, cin, tk, resident_nf):
    """out = ((adj @ [x, 1]) @ Wpad) / deg + b  (degree = ones column `cin`)."""
    k = pl.program_id(2)

    @pl.when(k == 0)
    def _():
        acc_ref[...] = jnp.zeros_like(acc_ref)

    if resident_nf:
        start = pl.multiple_of(k * tk, tk)
        nf = nf_ref[0, pl.ds(start, tk), :]                 # (TK, feat_w)
    else:
        nf = nf_ref[0]                                      # (TK, feat_w)
    # adj tile is fed to the MXU in its stored dtype -- no in-kernel cast.
    acc_ref[...] += jnp.dot(adj_ref[0], nf,
                            preferred_element_type=jnp.float32)

    @pl.when(k == pl.num_programs(2) - 1)
    def _():
        acc = acc_ref[...]                                  # (TM, feat_w)
        deg = acc[:, cin:cin + 1]                           # (TM, 1)
        # Rows >= cin of w_ref are zero, so the degree / padding columns of
        # `acc` contribute nothing to the projection.
        proj = jnp.dot(acc, w_ref[...],
                       preferred_element_type=jnp.float32)  # (TM, Cout_pad)
        inv = pl.reciprocal(deg, approx=False)              # keep 1e-5 exact
        out_ref[0] = (proj * inv + b_ref[...]).astype(out_ref.dtype)


def _gcn_kernel_agg(h_ref, adj_ref, out_ref, acc_ref, *, cout, tk, resident_h):
    """out = (adj @ [h, 1]) / deg, with h = x @ W^T + b precomputed."""
    k = pl.program_id(2)

    @pl.when(k == 0)
    def _():
        acc_ref[...] = jnp.zeros_like(acc_ref)

    if resident_h:
        start = pl.multiple_of(k * tk, tk)
        h = h_ref[0, pl.ds(start, tk), :]                   # (TK, feat_w)
    else:
        h = h_ref[0]
    acc_ref[...] += jnp.dot(adj_ref[0], h,
                            preferred_element_type=jnp.float32)

    @pl.when(k == pl.num_programs(2) - 1)
    def _():
        acc = acc_ref[...]                                  # (TM, feat_w)
        deg = acc[:, cout:cout + 1]                         # (TM, 1)
        inv = pl.reciprocal(deg, approx=False)
        cpad = out_ref.shape[-1]
        out_ref[0] = (acc[:, :cpad] * inv).astype(out_ref.dtype)


def gcn_layer(node_feats, adj_matrix, weight, bias):
    """node_feats: [B, N, Cin], adj_matrix: [B, N, N],
    weight: [Cout, Cin] (PyTorch nn.Linear layout), bias: [Cout]."""
    B, N, Cin = node_feats.shape
    Cout = weight.shape[0]
    out_dtype = node_feats.dtype

    # Stream adjacency as f32 directly (no bf16 round-trip pass over HBM).
    if adj_matrix.dtype != jnp.float32:
        adj_matrix = adj_matrix.astype(jnp.float32)
    nf_f32 = node_feats.astype(jnp.float32)
    w_f32 = weight.astype(jnp.float32)
    b_f32 = bias.astype(jnp.float32)

    # Generation-aware tile targets (keyed off VMEM capacity).
    vmem_cap = _tpu_vmem_bytes()
    if vmem_cap >= 96 * 1024 * 1024:       # v5e / v6e: 128 MiB VMEM
        tm_target, tk_target, adj_bufs = 512, 4096, 2
    else:                                   # v7x (64 MiB) or unknown
        tm_target, tk_target, adj_bufs = 512, 2048, 3

    TM, m_pad = _choose_tile(N, tm_target, 8)      # row tile (sublane dim)
    TK, k_pad = _choose_tile(N, tk_target, 128)    # reduction tile (lane dim)
    num_m, num_k = m_pad // TM, k_pad // TK

    adj_in = adj_matrix
    if m_pad != N or k_pad != N:
        # Padded rows get deg=0 (NaN output) but are sliced away below;
        # padded cols contribute nothing to the aggregation or the degree.
        adj_in = jnp.pad(adj_in, ((0, 0), (0, m_pad - N), (0, k_pad - N)))

    Cout_pad = _round_up(Cout, 128)                # lane-dense output
    reassoc = Cin <= Cout

    if reassoc:
        # Aggregate [x, 1] then project inside the kernel.
        feat_w = _round_up(Cin + 1, 128)           # lane-dense accumulator
        feats = jnp.zeros((B, k_pad, feat_w), jnp.float32)
        feats = feats.at[:, :N, :Cin].set(nf_f32)
        feats = feats.at[:, :N, Cin].set(1.0)      # degree column
        w_in = jnp.zeros((feat_w, Cout_pad), jnp.float32).at[:Cin, :Cout].set(
            w_f32.T)
        b_in = jnp.zeros((1, Cout_pad), jnp.float32).at[0, :Cout].set(b_f32)
        deg_col = Cin
    else:
        # Cout < Cin: project once up front (cheap vs the N^2 aggregation),
        # the kernel then only aggregates and divides.
        # TODO(synk): this projection is a plain XLA matmul; it could be fused
        # into a first Pallas pass if the extra HBM round trip ever matters.
        h = jnp.einsum("bnc,oc->bno", nf_f32, w_f32) + b_f32
        feat_w = Cout_pad if Cout < Cout_pad else Cout_pad + 128
        feats = jnp.zeros((B, k_pad, feat_w), jnp.float32)
        feats = feats.at[:, :N, :Cout].set(h)
        feats = feats.at[:, :N, Cout].set(1.0)     # degree column
        deg_col = Cout

    # Keep the feature slab VMEM-resident across the reduction when it fits
    # (fetched once per batch instead of once per row tile).
    feat_res_bytes = k_pad * feat_w * 4
    resident = 2 * feat_res_bytes <= max(4 * 1024 * 1024, vmem_cap // 8)
    if resident:
        feat_spec = pl.BlockSpec((1, k_pad, feat_w), lambda b, m, k: (b, 0, 0))
    else:
        feat_spec = pl.BlockSpec((1, TK, feat_w), lambda b, m, k: (b, k, 0))

    adj_idx = lambda b, m, k: (b, m, k)
    adj_spec, adj_bufs_eff = pl.BlockSpec((1, TM, TK), adj_idx), 2
    if adj_bufs > 2 and num_k >= adj_bufs:
        try:   # 3-deep adj buffering hides per-step DMA bubbles on v7x
            adj_spec = pl.BlockSpec((1, TM, TK), adj_idx,
                                    pipeline_mode=pl.Buffered(adj_bufs))
            adj_bufs_eff = adj_bufs
        except Exception:
            pass

    out_spec = pl.BlockSpec((1, TM, Cout_pad), lambda b, m, k: (b, m, 0))

    if reassoc:
        kernel = functools.partial(_gcn_kernel_reassoc, cin=deg_col, tk=TK,
                                   resident_nf=resident)
        in_specs = [feat_spec, adj_spec,
                    pl.BlockSpec((feat_w, Cout_pad), lambda b, m, k: (0, 0)),
                    pl.BlockSpec((1, Cout_pad), lambda b, m, k: (0, 0))]
        inputs = (feats, adj_in, w_in, b_in)
        param_bytes = 2 * (feat_w * Cout_pad + Cout_pad) * 4
    else:
        kernel = functools.partial(_gcn_kernel_agg, cout=deg_col, tk=TK,
                                   resident_h=resident)
        in_specs = [feat_spec, adj_spec]
        inputs = (feats, adj_in)
        param_bytes = 0

    # VMEM budget from the actual buffer sizes (+ headroom), capped below the
    # physical capacity of the current generation.
    feat_blk_bytes = (k_pad if resident else TK) * feat_w * 4
    needed = (adj_bufs_eff * TM * TK * adj_in.dtype.itemsize
              + 2 * feat_blk_bytes
              + 2 * TM * Cout_pad * jnp.dtype(out_dtype).itemsize
              + param_bytes
              + TM * feat_w * 4)                         # accumulator scratch
    vmem_limit = int(min(int(vmem_cap * 0.9),
                         max(needed + 16 * 1024 * 1024, 32 * 1024 * 1024)))

    out = pl.pallas_call(
        kernel,
        out_shape=jax.ShapeDtypeStruct((B, m_pad, Cout_pad), out_dtype),
        grid_spec=pltpu.PrefetchScalarGridSpec(
            num_scalar_prefetch=0,
            grid=(B, num_m, num_k),
            in_specs=in_specs,
            out_specs=out_spec,
            scratch_shapes=[pltpu.VMEM((TM, feat_w), jnp.float32)],
        ),
        compiler_params=pltpu.CompilerParams(
            dimension_semantics=("parallel", "parallel", "arbitrary"),
            vmem_limit_bytes=vmem_limit,
        ),
    )(*inputs)

    if m_pad != N or Cout_pad != Cout:
        out = out[:, :N, :Cout]
    return out


def gcn_layer_ref(node_feats, adj_matrix, weight, bias):
    """Pure-JAX reference mirroring the PyTorch forward."""
    num_neighbours = adj_matrix.sum(axis=-1, keepdims=True)
    h = node_feats @ weight.T + bias
    h = adj_matrix @ h
    return h / num_neighbours


if __name__ == "__main__":
    key = jax.random.PRNGKey(0)
    B, N, Cin, Cout = 2, 8, 4, 32

    k_nf, k_adj, k_w, k_b, k_w2, k_b2 = jax.random.split(key, 6)

    node_feats = jax.random.normal(k_nf, (B, N, Cin), dtype=jnp.float32)

    # Random undirected adjacency with self-loops (deg >= 1, no div-by-0).
    rand = jax.random.uniform(k_adj, (B, N, N))
    adj = (rand > 0.5).astype(jnp.float32)
    adj = jnp.maximum(adj, jnp.transpose(adj, (0, 2, 1)))
    adj = jnp.maximum(adj, jnp.eye(N, dtype=jnp.float32)[None])

    # nn.Linear(c_in, c_out)-style init: U(-1/sqrt(Cin), 1/sqrt(Cin)).
    bound = 1.0 / (Cin ** 0.5)
    weight = jax.random.uniform(k_w, (Cout, Cin), minval=-bound, maxval=bound,
                                dtype=jnp.float32)
    bias = jax.random.uniform(k_b, (Cout,), minval=-bound, maxval=bound,
                              dtype=jnp.float32)

    # Path A: Cin <= Cout (aggregate-then-project inside the kernel).
    out = jax.block_until_ready(gcn_layer(node_feats, adj, weight, bias))
    ref = gcn_layer_ref(node_feats, adj, weight, bias)
    assert out.shape == (B, N, Cout)
    assert jnp.allclose(out, ref, atol=1e-5, rtol=1e-5), "mismatch (reassoc)"

    # Path B: Cout < Cin (pre-projected aggregation-only kernel).
    Cout2 = 2
    weight2 = jax.random.uniform(k_w2, (Cout2, Cin), minval=-bound,
                                 maxval=bound, dtype=jnp.float32)
    bias2 = jax.random.uniform(k_b2, (Cout2,), minval=-bound, maxval=bound,
                               dtype=jnp.float32)
    out2 = jax.block_until_ready(gcn_layer(node_feats, adj, weight2, bias2))
    ref2 = gcn_layer_ref(node_feats, adj, weight2, bias2)
    assert out2.shape == (B, N, Cout2)
    assert jnp.allclose(out2, ref2, atol=1e-5, rtol=1e-5), "mismatch (agg)"

    print("KERNEL_OK")
</pallas_src>

<mosaic_0001>
module attributes {stable_mosaic.version = 11 : i64} {
  func.func @_gcn_kernel_reassoc(%arg0: i32, %arg1: i32, %arg2: i32, %arg3: memref<1x8x128xf32, #tpu.memory_space<vmem>>, %arg4: memref<1x8x8xf32, #tpu.memory_space<vmem>>, %arg5: memref<128x128xf32, #tpu.memory_space<vmem>>, %arg6: memref<1x128xf32, #tpu.memory_space<vmem>>, %arg7: memref<1x8x128xf32, #tpu.memory_space<vmem>>, %arg8: memref<8x128xf32, #tpu.memory_space<vmem>>) attributes {dimension_semantics = [#tpu.dimension_semantics<parallel>, #tpu.dimension_semantics<parallel>, #tpu.dimension_semantics<arbitrary>], iteration_bounds = array<i64: 2, 1, 1>, scalar_prefetch = 0 : i64, scratch_operands = 1 : i64, tpu.core_type = #tpu.core_type<tc>, window_params = [{transform_indices = @transform_0, window_bounds = array<i64: 1, 8, 128>}, {transform_indices = @transform_1, window_bounds = array<i64: 1, 8, 8>}, {pipeline_mode = #tpu.pipeline_mode<synchronous>, transform_indices = @transform_2, window_bounds = array<i64: 128, 128>}, {pipeline_mode = #tpu.pipeline_mode<synchronous>, transform_indices = @transform_3, window_bounds = array<i64: 1, 128>}, {transform_indices = @transform_4, window_bounds = array<i64: 1, 8, 128>}]} {
    %c0_i32 = arith.constant 0 : i32
    %0 = arith.cmpi eq, %arg2, %c0_i32 : i32
    %1 = arith.extui %0 : i1 to i32
    %c0_i32_0 = arith.constant 0 : i32
    %2 = arith.cmpi ne, %1, %c0_i32_0 : i32
    scf.if %2 {
      %cst_11 = arith.constant 0.000000e+00 : f32
      %17 = vector.broadcast %cst_11 : f32 to vector<8x128xf32>
      %c0_12 = arith.constant 0 : index
      %c0_13 = arith.constant 0 : index
      %18 = vector.load %arg8[%c0_12, %c0_13] : memref<8x128xf32, #tpu.memory_space<vmem>>, vector<8x128xf32>
      tpu.vector_store %arg8[%c0_12, %c0_13], %17 {strides = array<i32>} : memref<8x128xf32, #tpu.memory_space<vmem>>, vector<8x128xf32>,
    } else {
    }
    %c8_i32 = arith.constant 8 : i32
    %3 = arith.muli %arg2, %c8_i32 : i32
    %4 = tpu.assume_multiple %3, 8 : i32
    %c0 = arith.constant 0 : index
    %5 = arith.index_cast %4 : i32 to index
    %c0_1 = arith.constant 0 : index
    %6 = vector.load %arg3[%c0, %5, %c0_1] : memref<1x8x128xf32, #tpu.memory_space<vmem>>, vector<1x8x128xf32>
    %7 = vector.shape_cast %6 : vector<1x8x128xf32> to vector<8x128xf32>
    %c0_2 = arith.constant 0 : index
    %c0_3 = arith.constant 0 : index
    %8 = vector.load %arg8[%c0_2, %c0_3] : memref<8x128xf32, #tpu.memory_space<vmem>>, vector<8x128xf32>
    %c0_4 = arith.constant 0 : index
    %c0_5 = arith.constant 0 : index
    %c0_6 = arith.constant 0 : index
    %9 = vector.load %arg4[%c0_4, %c0_5, %c0_6] : memref<1x8x8xf32, #tpu.memory_space<vmem>>, vector<1x8x8xf32>
    %10 = vector.shape_cast %9 : vector<1x8x8xf32> to vector<8x8xf32>
    %cst = arith.constant dense<0.000000e+00> : vector<8x128xf32>
    %11 = tpu.matmul %10, %7, %cst {dimension_numbers = #tpu.dot_dimension_numbers<[1], [0], [0], [1], [0, 0, 1, 1], [], []>} : vector<8x8xf32>, vector<8x128xf32>, vector<8x128xf32> -> vector<8x128xf32>
    %12 = arith.addf %8, %11 : vector<8x128xf32>
    %c0_7 = arith.constant 0 : index
    %c0_8 = arith.constant 0 : index
    %13 = vector.load %arg8[%c0_7, %c0_8] : memref<8x128xf32, #tpu.memory_space<vmem>>, vector<8x128xf32>
    tpu.vector_store %arg8[%c0_7, %c0_8], %12 {strides = array<i32>} : memref<8x128xf32, #tpu.memory_space<vmem>>, vector<8x128xf32>,
    %c0_i32_9 = arith.constant 0 : i32
    %14 = arith.cmpi eq, %arg2, %c0_i32_9 : i32
    %15 = arith.extui %14 : i1 to i32
    %c0_i32_10 = arith.constant 0 : i32
    %16 = arith.cmpi ne, %15, %c0_i32_10 : i32
    scf.if %16 {
      %c0_11 = arith.constant 0 : index
      %c0_12 = arith.constant 0 : index
      %17 = vector.load %arg8[%c0_11, %c0_12] : memref<8x128xf32, #tpu.memory_space<vmem>>, vector<8x128xf32>
      %18 = vector.extract_strided_slice %17 {offsets = [0, 4], sizes = [8, 1], strides = [1, 1]} : vector<8x128xf32> to vector<8x1xf32>
      %c0_13 = arith.constant 0 : index
      %c0_14 = arith.constant 0 : index
      %19 = vector.load %arg5[%c0_13, %c0_14] : memref<128x128xf32, #tpu.memory_space<vmem>>, vector<128x128xf32>
      %cst_15 = arith.constant dense<0.000000e+00> : vector<8x128xf32>
      %20 = tpu.matmul %17, %19, %cst_15 {dimension_numbers = #tpu.dot_dimension_numbers<[1], [0], [0], [1], [0, 0, 1, 1], [], []>} : vector<8x128xf32>, vector<128x128xf32>, vector<8x128xf32> -> vector<8x128xf32>
      %21 = tpu.reciprocal %18 : vector<8x1xf32> -> vector<8x1xf32>
      %22 = vector.broadcast %21 : vector<8x1xf32> to vector<8x128xf32>
      %23 = arith.mulf %20, %22 : vector<8x128xf32>
      %c0_16 = arith.constant 0 : index
      %c0_17 = arith.constant 0 : index
      %24 = vector.load %arg6[%c0_16, %c0_17] : memref<1x128xf32, #tpu.memory_space<vmem>>, vector<1x128xf32>
      %25 = vector.broadcast %24 : vector<1x128xf32> to vector<8x128xf32>
      %26 = arith.addf %23, %25 : vector<8x128xf32>
      %c0_18 = arith.constant 0 : index
      %c0_19 = arith.constant 0 : index
      %c0_20 = arith.constant 0 : index
      %27 = vector.load %arg7[%c0_18, %c0_19, %c0_20] : memref<1x8x128xf32, #tpu.memory_space<vmem>>, vector<1x8x128xf32>
      %28 = vector.shape_cast %27 : vector<1x8x128xf32> to vector<8x128xf32>
      %29 = vector.shape_cast %26 : vector<8x128xf32> to vector<1x8x128xf32>
      tpu.vector_store %arg7[%c0_18, %c0_19, %c0_20], %29 {strides = array<i32>} : memref<1x8x128xf32, #tpu.memory_space<vmem>>, vector<1x8x128xf32>,
    } else {
    }
    return
  }
  func.func @transform_0(%arg0: i32, %arg1: i32, %arg2: i32) -> (i32, i32, i32) {
    %c0_i32 = arith.constant 0 : i32
    %c0_i32_0 = arith.constant 0 : i32
    %c0_i32_1 = arith.constant 0 : i32
    return %arg0, %c0_i32, %c0_i32_0 : i32, i32, i32
  }
  func.func @transform_1(%arg0: i32, %arg1: i32, %arg2: i32) -> (i32, i32, i32) {
    %c0_i32 = arith.constant 0 : i32
    return %arg0, %arg1, %arg2 : i32, i32, i32
  }
  func.func @transform_2(%arg0: i32, %arg1: i32, %arg2: i32) -> (i32, i32) {
    %c0_i32 = arith.constant 0 : i32
    %c0_i32_0 = arith.constant 0 : i32
    %c0_i32_1 = arith.constant 0 : i32
    return %c0_i32, %c0_i32_0 : i32, i32
  }
  func.func @transform_3(%arg0: i32, %arg1: i32, %arg2: i32) -> (i32, i32) {
    %c0_i32 = arith.constant 0 : i32
    %c0_i32_0 = arith.constant 0 : i32
    %c0_i32_1 = arith.constant 0 : i32
    return %c0_i32, %c0_i32_0 : i32, i32
  }
  func.func @transform_4(%arg0: i32, %arg1: i32, %arg2: i32) -> (i32, i32, i32) {
    %c0_i32 = arith.constant 0 : i32
    %c0_i32_0 = arith.constant 0 : i32
    return %arg0, %arg1, %c0_i32 : i32, i32, i32
  }
}

</mosaic_0001>

<bundles_post_ra>
// kernel: tpu_custom_call.1
= control target key start
LH: loop header
LB: loop body
LE: loop exit
PB: predicated region body
PF: predicated region fallthrough
CT: control target
= control target key end

     0   :  { %s1178_s0 = inlined_call_operand.hbm [shape: f32[2,8,128], index: 0, kind: input, shape index: {}]   ;;  %s1179_s1 = inlined_call_operand.hbm [shape: f32[2,8,8], index: 1, kind: input, shape index: {}]   ;;  %s1180_s2 = inlined_call_operand.hbm [shape: f32[128,128], index: 2, kind: input, shape index: {}]   ;;  %s1181_s3 = inlined_call_operand.vmem [shape: f32[1,128], index: 3, kind: input, shape index: {}]   ;;  %s1182_s4 = inlined_call_operand.hbm [shape: f32[2,8,128], index: 4, kind: output, shape index: {}]  }
   0x1   :  { %1184 = sst [smem:[#allocation15_spill]] %s1180_s2 }
   0x2   :  { %9 = vsyncpa [#allocation4], 0 }
   0x3   :  { %11 = vsyncpa [#allocation4 + $0x1], 0 }
   0x4   :  { %12 = vsyncpa [#allocation7], 0 }
   0x5   :  { %14 = vsyncpa [#allocation7 + $0x1], 0 }
   0x6   :  { %15 = vsyncpa [#allocation5], 0 }
   0x7   :  { %17 = vsyncpa [#allocation5 + $0x1], 0  ;;  %s987_s15 = smov 0   ;;  %s989_s16 = smov 0  }
   0x8   :  { %s991_s17 = smov 0   ;;  %s993_s18 = smov 0  }
   0x9   :  { %s995_s19 = smov 0   ;;  %s997_s20 = smov 0  }
   0xa LB: > { %s1018_s21 = sadd.s32 4294967295, %s951_s20   ;;  %s617_s22 = sadd.s32 4294967294, %s951_s20   ;;  %s951_s20 = sphi %s997_s20, %s23_s20   ;;  %s947_s19 = sphi %s995_s19, %s1202_s19   ;;  %s943_s18 = sphi %s993_s18, %s1201_s18   ;;  %s939_s17 = sphi %s991_s17, %s1200_s17   ;;  %s935_s16 = sphi %s989_s16, %s1199_s16   ;;  %s931_s15 = sphi %s987_s15, %s1198_s15  }
   0xb   : > { %p62_p0 = scmp.ne.s32.totalorder %s935_s16, %s931_s15  ;;  %p63_p1 = scmp.eq.s32.totalorder %s1018_s21, 0 }
   0xc   : > { %p166_p3 = scmp.eq.s32.totalorder %s617_s22, 1  ;;  %p618_p5 = scmp.ge.s32.totalorder %s951_s20, 1 }
   0xd   : > { %p1027_p4 = por %p63_p1, %p62_p0  ;;  %p173_p7 = scmp.lt.s32.totalorder %s951_s20, 3 }
   0xe   : > { %p1032_p6 = por %p166_p3, %p62_p0  ;;  %s953_s26 = smov [#allocation8]  }
   0xf   : > { %p1037_p8 = pnand %p618_p5, %p173_p7  ;;  %s185_s27 = sshll.u32 %s953_s26, 4  ;;  %s186_s27 = int_to_ptr.vmem [resolvable:$true] %s185_s27 }
  0x10   : > { %s1186_s24 = scalar_select %p1032_p6, 1, 0 }
  0x11   : > { %p705_p9 = pneg %p1037_p8  ;;  %s42_s29 = sadd.s32 1, %s947_s19 }
  0x12   : > { %s792_s30 = scalar_lea.vmem %s186_s27, 2048  ;;  %p800_p5 = scmp.lt.s32.totalorder %s186_s27, %s186_s27 }
  0x13   : > { %p1046_p11 = pnand %p705_p9, %p63_p1  ;;  %p793_p13 = scmp.ne.s32.totalorder %s186_s27, %s792_s30 }
  0x14   : > { %p801_p7 = scmp.lt.s32.totalorder %s792_s30, %s792_s30 }
  0x15   : > { %p783_p12 = pneg %p1046_p11 }
  0x16   : > { %p802_p2 = por %p801_p7, %p800_p5 }
  0x17   : > { %p795_p0 = pnand %p793_p13, %p783_p12 }
  0x19   : > { %p796_p3 = pneg %p795_p0 }
  0x1b   : > { %p803_p6 = pnand %p802_p2, %p796_p3 }
  0x1d   : > { %806 = shalt.err (!%p803_p6)
}
  0x1e   : > { %s954_s5 = smov 128   ;;  %s955_s6 = smov 8  }
  0x1f   : > { %s1189_s2 = sld [smem:[#allocation15_spill]]  ;;  %p44_p2 = scmp.ge.s32.totalorder %s42_s29, 2 }
  0x20   : > { %s49_s9 = sadd.s32 1, %s939_s17  ;;  %p56_p6 = scmp.ne.s32.totalorder %s939_s17, %s935_s16 }
  0x21   : > { %p57_p9 = scmp.eq.s32.totalorder %s951_s20, 0  ;;  %s1204_s29 = smov (%p44_p2, %s42_s29), 0 }
  0x22   : > { %1190 = sst [smem:[#allocation14_spill]] %s1204_s29  ;;  %p1192_p13 = scmp.eq.s32.totalorder %s1018_s21, 1 }
  0x23   : > { %p1064_p12 = por %p57_p9, %p56_p6  ;;  %s46_s12 = ssub.s32 %s947_s19, %s1204_s29 }
  0x24   : > { %p1070_p0 = por %p1192_p13, %p56_p6  ;;  %p47_p3 = scmp.eq.s32.totalorder %s46_s12, 0 }
  0x25   : > { %708 = dma.hbm_to_vmem [thread:$0]  (!%p1046_p11), %s1189_s2, 2048, %s186_s27, [#allocation7], %s954_s5, %s954_s5, %s955_s6  }
  0x26   : > { %p721_p11 = scmp.lt.s32.totalorder %s951_s20, 2  ;;  %s202_s13 = sand.u32 1, %s939_s17  }
  0x27   : > { %s621_s14 = sshll.u32 %s202_s13, 3  ;;  %s622_s26 = sshll.u32 %s947_s19, 7 }
  0x28   : > { %s1079_s22 = scalar_select %p47_p3, %s939_s17, %s49_s9  }
  0x29   : > { %s211_s30 = scalar_lea.hbm %s1178_s0, %s622_s26  ;;  %s206_s5 = scalar_lea.vmem [#allocation3], %s621_s14 }
  0x2a   : > { %s213_s6 = sshll.u32 %s206_s5, 4  ;;  %p1087_p5 = pnand %p721_p11, %p1064_p12  ;;  %s214_s6 = int_to_ptr.vmem [resolvable:$true] %s213_s6 }
  0x2b   : > { %s1094_s9 = scalar_lea.hbm %s1179_s1, %s622_s26  ;;  %s220_s12 = sand.u32 1, %s951_s20  }
  0x2c   : > { %s203_s29 = scalar_lea.sflag [#allocation4], %s202_s13  ;;  %p809_p7 = pneg %p1087_p5 }
  0x2d   : > { %s820_s27 = scalar_lea.vmem %s214_s6, 128  ;;  %s956_s10 = smov [#allocation3]  }
  0x2e   : > { %p821_p2 = scmp.ne.s32.totalorder %s214_s6, %s820_s27  ;;  %s825_s28 = sshll.u32 %s956_s10, 4  ;;  %s826_s28 = int_to_ptr.vmem [resolvable:$false] %s825_s28 }
  0x2f   : > { %s827_s5 = scalar_lea.vmem %s826_s28, 256  ;;  %p828_p12 = scmp.lt.s32.totalorder %s214_s6, %s826_s28 }
  0x30   : > { %p823_p6 = pnand %p821_p2, %p809_p7  ;;  %p829_p13 = scmp.lt.s32.totalorder %s827_s5, %s820_s27 }
  0x32   : > { %p824_p9 = pneg %p823_p6  ;;  %p830_p11 = por %p829_p13, %p828_p12 }
  0x34   : > { %p831_p3 = pnand %p830_p11, %p824_p9 }
  0x36   : > { %834 = shalt.err (!%p831_p3)
}
  0x37   : > { %712 = dma.hbm_to_vmem [thread:$0]  (!%p1087_p5), %s211_s30, 128, %s214_s6, %s203_s29  }
  0x38   : > { %s224_s2 = scalar_lea.vmem [#allocation6], %s621_s14  ;;  %s221_s26 = scalar_lea.sflag [#allocation7], %s220_s12 }
  0x39   : > { %s233_s13 = sshll.u32 %s224_s2, 4  ;;  %s957_s10 = smov [#allocation6]   ;;  %s234_s13 = int_to_ptr.vmem [resolvable:$true] %s233_s13 }
  0x3a   : > { %s848_s8 = scalar_lea.vmem %s234_s13, 128  ;;  %s853_s28 = sshll.u32 %s957_s10, 4  ;;  %s854_s28 = int_to_ptr.vmem [resolvable:$false] %s853_s28 }
  0x3b   : > { %p849_p2 = scmp.ne.s32.totalorder %s234_s13, %s848_s8  ;;  %s855_s27 = scalar_lea.vmem %s854_s28, 256 }
  0x3c   : > { %p856_p9 = scmp.lt.s32.totalorder %s234_s13, %s854_s28  ;;  %p857_p12 = scmp.lt.s32.totalorder %s855_s27, %s848_s8 }
  0x3d   : > { %p851_p6 = pnand %p849_p2, %p809_p7 }
  0x3e   : > { %p858_p13 = por %p857_p12, %p856_p9 }
  0x3f   : > { %p852_p10 = pneg %p851_p6 }
  0x41   : > { %p859_p11 = pnand %p858_p13, %p852_p10 }
  0x43   : > { %862 = shalt.err (!%p859_p11)
}
  0x44   : > { %715 = dma.hbm_to_vmem [thread:$0]  (!%p1087_p5), %s1094_s9, 128, %s234_s13, %s221_s26  }
  0x45   : > { %242 = sbr.rel (%p1037_p8) target bundleno = 487 (0x1e7), region = 36  ;;  %s1113_s29 = sand.u32 (!%p1037_p8), 1, %s935_s16  }
  0x46   : > { %s1116_s14 = sshll.u32 (!%p1037_p8), %s1113_s29, 3  ;;  %s245_s30 = scalar_lea.sflag (!%p1037_p8), [#allocation4], %s1113_s29 }
  0x47   : > { %s248_s6 = scalar_lea.vmem (!%p1037_p8), [#allocation3], %s1116_s14 }
  0x4a   : > { %914 = dma.done.wait (%p1027_p4), %s245_s30, 128  }
  0x4b   : > { %916 = vsyncadd (%p1027_p4), %s245_s30, 4294967168  ;;  %s253_s25 = sand.u32 1, %s1018_s21   ;;  %s257_s9 = scalar_lea.vmem [#allocation6], %s1116_s14 }
  0x4c   : > { %s254_s7 = scalar_lea.sflag [#allocation7], %s253_s25 }
  0x4d   : > { %918 = dma.done.wait (%p1027_p4), %s254_s7, 128  }
  0x4e   : > { %920 = vsyncadd (%p1027_p4), %s254_s7, 4294967168 }
  0x4f   : > { %922 = dma.done.wait (%p63_p1), [#allocation7], 2048  }
  0x50   : > { %924 = vsyncadd (%p63_p1), [#allocation7], 4294965248  ;;  %v958_v0 = vmov 0.0   ;;  %vm959_vm0 = vmmov 0   ;;  %vm301_vm1 = vcmask 64512   ;;  %v298_v1 = vld [vmem:[%s248_s6] sm:$0xff] }
  0x51   : > { %655 = vmatprep.subr.mxu0 %v958_v0  ;;  %657 = vmatprep.mubr.msk.f32.mxu0 %vm959_vm0, %v958_v0  ;;  %v300_v2 = vld [vmem:[%s257_s9] sm:$0xff]  ;;  %v394_v5 = vld [vmem:[#allocation8 + $0x68] sm:$0xff]  ;;  %v393_v6 = vld [vmem:[#allocation8 + $0x60] sm:$0xff]  ;;  %v960_v19 = vmov 4   ;;  %s633_s12 = sshll.u32 %s943_s18, 7  ;;  %s290_s5 = scalar_lea.vmem [#allocation9], %s1116_s14 }
  0x52   : > { %660 = vmatprep.subr.mxu1 %v958_v0  ;;  %692 = vmatprep.mubr.msk.f32.mxu1 %vm959_vm0, %v958_v0  ;;  %v396_v3 = vld [vmem:[#allocation8 + $0x78] sm:$0xff]  ;;  %v395_v4 = vld [vmem:[#allocation8 + $0x70] sm:$0xff]  ;;  %v390_v9 = vld [vmem:[#allocation8 + $0x48] sm:$0xff]  ;;  %s498_s2 = sshll.u32 %s290_s5, 4  ;;  %s496_s8 = scalar_lea.hbm %s1182_s4, %s633_s12  ;;  %s499_s2 = int_to_ptr.vmem [resolvable:$true] %s498_s2 }
  0x53   : > { %656 = vmatpush3.msra.mxu0 %v298_v1  ;;  %661 = vmatpush3.msra.mxu1 %v396_v3  ;;  %v392_v7 = vld [vmem:[#allocation8 + $0x58] sm:$0xff]  ;;  %v391_v8 = vld [vmem:[#allocation8 + $0x50] sm:$0xff]  ;;  %v389_v10 = vld [vmem:[#allocation8 + $0x40] sm:$0xff]  ;;  %s484_s10 = scalar_lea.sflag [#allocation5], %s1113_s29  ;;  %s863_s28 = scalar_lea.vmem %s499_s2, 128 }
  0x54   : > { %658 = vmatmul.mubr.msk.f32.vlgmr.msra.gmra.mxu0 %vm301_vm1, %v300_v2  ;;  %662 = vmatprep.subr.mxu1 %v958_v0  ;;  %v388_v11 = vld [vmem:[#allocation8 + $0x38] sm:$0xff]  ;;  %v387_v12 = vld [vmem:[#allocation8 + $0x30] sm:$0xff]  ;;  %v386_v13 = vld [vmem:[#allocation8 + $0x28] sm:$0xff]  ;;  %p864_p1 = scmp.ne.s32.totalorder %s499_s2, %s863_s28  ;;  %s961_s27 = smov [#allocation9]  }
  0x55   : > { %663 = vmatpush3.msra.mxu1 %v395_v4  ;;  %v385_v14 = vld [vmem:[#allocation8 + $0x20] sm:$0xff]  ;;  %v384_v15 = vld [vmem:[#allocation8 + $0x18] sm:$0xff]  ;;  %v383_v16 = vld [vmem:[#allocation8 + $0x10] sm:$0xff]  ;;  %778 = vset.pattern.permute.xlu0 %v960_v19  ;;  %s867_s30 = sshll.u32 %s961_s27, 4  ;;  %s868_s30 = int_to_ptr.vmem [resolvable:$false] %s867_s30 }
  0x56   : > { %664 = vmatprep.subr.mxu1 %v958_v0  ;;  %v382_v17 = vld [vmem:[#allocation8 + $0x8] sm:$0xff]  ;;  %v381_v18 = vld [vmem:[#allocation8] sm:$0xff]  ;;  %p865_p4 = pnand %p864_p1, %p1070_p0  ;;  %s869_s18 = scalar_lea.vmem %s868_s30, 256 }
  0x57   : > { %665 = vmatpush3.msra.mxu1 %v394_v5  ;;  %v631_v25 = vld [vmem:[%s1181_s3] ss:$0 sm:$0xff]  ;;  %p870_p10 = scmp.lt.s32.totalorder %s499_s2, %s868_s30  ;;  %p871_p5 = scmp.lt.s32.totalorder %s869_s18, %s863_s28 }
  0x58   : > { %666 = vmatprep.subr.mxu1 %v958_v0  ;;  %p866_p8 = pneg %p865_p4 }
  0x59   : > { %667 = vmatpush3.msra.mxu1 %v393_v6  ;;  %p872_p7 = por %p871_p5, %p870_p10 }
  0x5a   : > { %668 = vmatprep.subr.mxu1 %v958_v0 }
  0x5b   : > { %669 = vmatpush3.msra.mxu1 %v392_v7  ;;  %p873_p3 = pnand %p872_p7, %p866_p8 }
  0x5c   : > { %670 = vmatprep.subr.mxu1 %v958_v0 }
  0x5d   : > { %671 = vmatpush3.msra.mxu1 %v391_v8 }
  0x5e   : > { %672 = vmatprep.subr.mxu1 %v958_v0 }
  0x5f   : > { %673 = vmatpush3.msra.mxu1 %v390_v9 }
  0x60   : > { %674 = vmatprep.subr.mxu1 %v958_v0 }
  0x61   : > { %675 = vmatpush3.msra.mxu1 %v389_v10 }
  0x62   : > { %676 = vmatprep.subr.mxu1 %v958_v0 }
  0x63   : > { %677 = vmatpush3.msra.mxu1 %v388_v11 }
  0x64   : > { %678 = vmatprep.subr.mxu1 %v958_v0 }
  0x65   : > { %679 = vmatpush3.msra.mxu1 %v387_v12 }
  0x66   : > { %680 = vmatprep.subr.mxu1 %v958_v0 }
  0x67   : > { %681 = vmatpush3.msra.mxu1 %v386_v13 }
  0x68   : > { %682 = vmatprep.subr.mxu1 %v958_v0 }
  0x69   : > { %683 = vmatpush3.msra.mxu1 %v385_v14 }
  0x6a   : > { %684 = vmatprep.subr.mxu1 %v958_v0 }
  0x6b   : > { %685 = vmatpush3.msra.mxu1 %v384_v15 }
  0x6c   : > { %686 = vmatprep.subr.mxu1 %v958_v0 }
  0x6d   : > { %687 = vmatpush3.msra.mxu1 %v383_v16 }
  0x6e   : > { %688 = vmatprep.subr.mxu1 %v958_v0 }
  0x6f   : > { %689 = vmatpush3.msra.mxu1 %v382_v17 }
  0x70   : > { %690 = vmatprep.subr.mxu1 %v958_v0 }
  0x71   : > { %691 = vmatpush3.msra.mxu1 %v381_v18 }
 0x114   : > { %v371_v20 = vpop.f32.mrf.mxu0 }
 0x115   : > { %779 = vrcp.f32 %v371_v20  ;;  %693 = vmatmul.mubr.f32.vlgmr.msra.gmra.mxu1 %v371_v20 }
 0x116   : > { %v659_v21 = vpop.f32.mrf.mxu0 }
 0x122   : > { %v780_v22 = vpop.eup %779 }
 0x123   : > { %470 = vperm.xlu0 %778, %v780_v22  }
 0x19e   : > { %v471_v23 = vpop.permute.xlu0 %470 }
 0x1d5   : > { %v463_v24 = vpop.f32.mrf.mxu1 }
 0x1d6   : > { %v473_v26 = vmul.f32 %v471_v23, %v463_v24 }
 0x1d7   : > { %v694_v27 = vpop.f32.mrf.mxu1 }
 0x1d8   : > { %v481_v28 = vadd.f32 %v631_v25, %v473_v26 }
 0x1da   : > { %482 = vst [vmem:[%s290_s5] sm:$0xff] %v481_v28 }
 0x1db   : > { %876 = shalt.err (!%p873_p3)
}
 0x1dc   : > { %s877_s14 = scalar_lea.hbm %s496_s8, 128  ;;  %s881_s25 = scalar_lea.hbm %s1182_s4, 256 }
 0x1dd   : > { %p878_p2 = scmp.ne.s32.totalorder %s496_s8, %s877_s14  ;;  %p882_p12 = scmp.lt.s32.totalorder %s496_s8, %s1182_s4 }
 0x1de   : > { %p883_p13 = scmp.lt.s32.totalorder %s881_s25, %s877_s14 }
 0x1df   : > { %p879_p6 = pnand %p878_p2, %p1070_p0 }
 0x1e0   : > { %p884_p11 = por %p883_p13, %p882_p12 }
 0x1e1   : > { %p880_p9 = pneg %p879_p6 }
 0x1e3   : > { %p885_p1 = pnand %p884_p11, %p880_p9 }
 0x1e5   : > { %888 = shalt.err (!%p885_p1)
}
 0x1e6   : > { %703 = dma.vmem_to_hbm [thread:$0]  (%p1070_p0), %s499_s2, 128, %s496_s8, %s484_s10  }
 0x1e7 PF: > { %s510_s21 = sand.u32 1, %s931_s15   ;;  %p1195_p4 = scmp.ne.s32.totalorder %s1186_s24, 0 }
 0x1e8   : > { %p1196_p8 = scmp.ge.s32.totalorder %s951_s20, 2  ;;  %s511_s23 = scalar_lea.sflag [#allocation5], %s510_s21 }
 0x1ea   : > { %p717_p10 = pnand %p1196_p8, %p1195_p4 }
 0x1ec   : > { %p718_p5 = pneg %p717_p10 }
 0x1ee   : > { %926 = dma.done.wait (%p718_p5), %s511_s23, 128  }
 0x1ef   : > { %928 = vsyncadd (%p718_p5), %s511_s23, 4294967168  ;;  %s23_s20 = sadd.s32 1, %s951_s20   ;;  %s1197_s11 = sld [smem:[#allocation14_spill]] }
 0x1f0   : > { %p20_p7 = scmp.ge.s32.totalorder %s23_s20, 4   ;;  %s1198_s15 = smov %s935_s16 }
 0x1f1   : > { %s1199_s16 = smov %s939_s17  ;;  %s1200_s17 = smov %s1079_s22 }
 0x1f2   : > { %s1201_s18 = smov %s947_s19  ;;  %22 = sbr.rel (!%p20_p7) target bundleno = 10 (0xa), region = 107 }
 0x1f5   : > { %s1202_s19 = smov %s1197_s11 }
 0x1f7   :  { %516 = vsyncpa [#allocation4], 1 }
 0x1f8   :  { %518 = vsyncpa [#allocation4 + $0x1], 1 }
 0x1f9   :  { %519 = vsyncpa [#allocation7], 1 }
 0x1fa   :  { %521 = vsyncpa [#allocation7 + $0x1], 1 }
 0x1fb   :  { %522 = vsyncpa [#allocation5], 1 }
 0x1fc   :  { %524 = vsyncpa [#allocation5 + $0x1], 1 }

</bundles_post_ra>
